<compile_context>
chip_gen: v5e
topology: v5e:2x2
jax: 0.10.0
libtpu: 0.0.40
codegen_flags: <defaults>
</compile_context>

<pallas_src>
import functools
import math

import jax
import jax.numpy as jnp
from jax.experimental import pallas as pl
from jax.experimental.pallas import tpu as pltpu


def _cdiv(a, b):
    return -(-a // b)


def _round_up(x, m):
    return _cdiv(x, m) * m


def _sab_kernel(x_ref, wqkv_ref, bqkv_ref, wo_ref, sel_ref, bo_ref, o_ref, *,
                num_heads, dh, tb, n, use_sel, compute_dtype):
    rows = tb * n
    dq = num_heads * dh
    cd = compute_dtype

    # Fused, head-padded Q|K|V projection: one MXU matmul + one bias add.
    qkv = (jnp.dot(x_ref[...], wqkv_ref[...],
                   preferred_element_type=jnp.float32) + bqkv_ref[...])

    head_outs = []
    for h in range(num_heads):                       # static; slices 128-aligned
        q = qkv[:, h * dh:(h + 1) * dh].reshape(tb, n, dh)
        k = qkv[:, dq + h * dh:dq + (h + 1) * dh].reshape(tb, n, dh)
        v = qkv[:, 2 * dq + h * dh:2 * dq + (h + 1) * dh].reshape(tb, n, dh)

        # Scores batched over the tb sets; contraction is on the last dim of
        # both operands (no explicit transpose).  K was pre-scaled by
        # 1/sqrt(dim_V) in the wrapper; padded lanes are exact zeros.
        s = jnp.einsum("bnd,bmd->bnm", q.astype(cd), k.astype(cd),
                       preferred_element_type=jnp.float32)        # (tb, n, n)
        s = s - jnp.max(s, axis=-1, keepdims=True)                # stable softmax
        e = jnp.exp(s)
        denom = jnp.sum(e, axis=-1, keepdims=True)
        inv = pl.reciprocal(denom, approx=True)                   # EUP slot
        inv = inv * (2.0 - denom * inv)                           # 1 Newton step
        a = e * inv

        av = jnp.einsum("bnm,bmd->bnd", a.astype(cd), v.astype(cd),
                        preferred_element_type=jnp.float32)       # (tb, n, dh)
        head_outs.append((q + av).reshape(rows, dh))              # residual: unscaled q

    # Concatenation of whole 128-lane slabs at 128-aligned offsets: no lane
    # shuffles, just adjacent vreg columns.
    o_wide = head_outs[0] if num_heads == 1 else jnp.concatenate(head_outs, axis=-1)

    # Compact heads back to the dim_V lane layout with an exact 0/1 selection
    # matmul (kept f32 -> bit-exact gather on the MXU), then fuse
    # O = O + relu(fc_o(O)).  wo/bo were pre-laid-out for the wide/padded
    # shapes in the wrapper (zero rows/cols for padded lanes).
    if use_sel:
        o = jnp.dot(o_wide, sel_ref[...], preferred_element_type=jnp.float32)
    else:
        o = o_wide
    o = o + jnp.maximum(
        jnp.dot(o_wide.astype(cd), wo_ref[...],
                preferred_element_type=jnp.float32) + bo_ref[...], 0.0)
    o_ref[...] = o.astype(o_ref.dtype)


def _vmem_bytes_estimate(tb, n, dim_in, dq, dv_out, itemsize=4):
    """Rough per-step VMEM footprint (double-buffered blocks + intermediates)."""
    r = tb * n
    elems = (2 * r * dim_in                         # x block (double-buffered)
             + 2 * r * dv_out                       # out block (double-buffered)
             + 2 * (dim_in * 3 * dq + 3 * dq        # wqkv / bqkv
                    + 2 * dq * dv_out + dv_out)     # wo_wide / sel / bo
             + r * 3 * dq                           # qkv intermediate
             + 4 * r * dq                           # per-head views + o_wide
             + tb * n * n                           # one head's score tile
             + 2 * r * dv_out)                      # epilogue temporaries
    return itemsize * elems


def _pick_tb(B, N, dim_in, dq, dv_out, *, row_target=512, vmem_budget=20 << 20):
    """Number of whole sets per grid step.

    * tb*N must be a multiple of 8 (sublane constraint) -> tb is a multiple of
      tb0 = 8 / gcd(N, 8).
    * tb*N targets ~row_target rows/step (amortizes ~0.35us/step overhead;
      measured tiled kernels reach ~85% of HBM roofline only at >=512 rows).
    * keep >= 2 grid steps when B allows it so both v7x TensorCores get work.
    * tb does NOT have to divide B: the wrapper zero-pads whole sets and the
      grid is cdiv(B, tb); tb is rebalanced to minimize that padding.
    * capped so the per-step VMEM estimate stays under vmem_budget (v7x has
      only 64 MiB physical / 32 MiB default-scoped VMEM).
    """
    tb0 = 8 // math.gcd(N, 8)
    tb = max(tb0, (row_target // (tb0 * N)) * tb0)
    if B > tb0 and _cdiv(B, tb) < 2:                 # at least 2 steps (megacore)
        tb = max(tb0, (_cdiv(B, 2) // tb0) * tb0)
    steps = _cdiv(B, tb)                             # rebalance to cut padding
    tb = min(tb, max(tb0, _round_up(_cdiv(B, steps), tb0)))
    while tb > tb0 and _vmem_bytes_estimate(tb, N, dim_in, dq, dv_out) > vmem_budget:
        tb -= tb0
    return tb


@functools.partial(jax.jit, static_argnames=("num_heads", "compute_dtype"))
def sab_forward(x, params, num_heads, compute_dtype=jnp.float32):
    B, N, dim_in = x.shape
    dim_V = params["wq"].shape[1]
    assert dim_V % num_heads == 0
    ds = dim_V // num_heads

    # Lane-aligned widths: each head padded to a multiple of 128 lanes and the
    # output padded to a multiple of 128 lanes (no padding when already aligned).
    dh = ds if ds % 128 == 0 else _round_up(ds, 128)
    dq = num_heads * dh
    dv_out = dim_V if dim_V % 128 == 0 else _round_up(dim_V, 128)
    use_sel = (dh != ds) or (dv_out != dim_V)

    f32 = jnp.float32
    scale = 1.0 / math.sqrt(dim_V)

    def pad_heads(w, s=1.0):
        # (rows, dim_V) -> (rows, num_heads*dh), each head in its own
        # 128-aligned lane slab, exact zeros in the padded lanes.
        r = w.shape[0]
        slab = jnp.zeros((r, num_heads, dh), f32)
        slab = slab.at[:, :, :ds].set((w * s).astype(f32).reshape(r, num_heads, ds))
        return slab.reshape(r, num_heads * dh)

    # Fused Q|K|V weights; attention scale folded into K
    # (softmax(q @ (s*k)^T) == softmax(s * (q @ k^T)); Q stays unscaled so the
    # residual is exact).
    wqkv = jnp.concatenate([pad_heads(params["wq"]),
                            pad_heads(params["wk"], scale),
                            pad_heads(params["wv"])], axis=1)       # (dim_in, 3*dq)
    bqkv = jnp.concatenate([pad_heads(params["bq"]),
                            pad_heads(params["bk"], scale),
                            pad_heads(params["bv"])], axis=1)       # (1, 3*dq)

    # fc_o weights in the wide head-padded row layout; output cols padded.
    wo_wide = jnp.zeros((num_heads, dh, dv_out), f32)
    wo_wide = wo_wide.at[:, :ds, :dim_V].set(
        params["wo"].reshape(num_heads, ds, dim_V)).reshape(dq, dv_out)
    bo_pad = jnp.zeros((1, dv_out), f32).at[:, :dim_V].set(params["bo"])

    # Exact 0/1 selection matrix: wide head layout -> compact dim_V lanes.
    sel = jnp.zeros((num_heads, dh, dv_out), f32)
    sel = sel.at[:, :ds, :].set(
        jnp.eye(dim_V, dv_out, dtype=f32).reshape(num_heads, ds, dv_out))
    sel = sel.reshape(dq, dv_out)

    # Optional bf16 compute path (v6e/v7x MXU); accumulation stays f32,
    # biases and the selection matrix stay f32.
    x_c = x.astype(compute_dtype)
    wqkv = wqkv.astype(compute_dtype)
    wo_wide = wo_wide.astype(compute_dtype)

    # Row tiling: blocks of tb whole sets; pad B up to a multiple of tb.
    tb = _pick_tb(B, N, dim_in, dq, dv_out)
    steps = _cdiv(B, tb)
    b_pad = steps * tb

    x_flat = x_c.reshape(B * N, dim_in)
    if b_pad != B:
        x_flat = jnp.pad(x_flat, ((0, (b_pad - B) * N), (0, 0)))

    kernel = functools.partial(_sab_kernel, num_heads=num_heads, dh=dh, tb=tb,
                               n=N, use_sel=use_sel, compute_dtype=compute_dtype)

    def invariant(shape):
        return pl.BlockSpec(shape, lambda b: (0,) * len(shape))

    vmem_limit = int(min(48 << 20,
                         max(16 << 20,
                             2 * _vmem_bytes_estimate(tb, N, dim_in, dq, dv_out))))

    # TODO(synk): on VMEM-tight v7x configs, single-buffer the invariant weight
    # specs (pipeline_mode=pl.Buffered(1)) since their block index never changes.
    out_flat = pl.pallas_call(
        kernel,
        out_shape=jax.ShapeDtypeStruct((b_pad * N, dv_out), x.dtype),
        grid=(steps,),
        in_specs=[
            pl.BlockSpec((tb * N, dim_in), lambda b: (b, 0)),   # X rows
            invariant((dim_in, 3 * dq)),                        # fused Wq|Wk|Wv (head-padded)
            invariant((1, 3 * dq)),                             # fused bq|bk|bv
            invariant((dq, dv_out)),                            # Wo (wide row layout)
            invariant((dq, dv_out)),                            # head -> dim_V selection
            invariant((1, dv_out)),                             # bo
        ],
        out_specs=pl.BlockSpec((tb * N, dv_out), lambda b: (b, 0)),
        compiler_params=pltpu.CompilerParams(
            dimension_semantics=("parallel",),
            vmem_limit_bytes=vmem_limit),
    )(x_flat, wqkv, bqkv, wo_wide, sel, bo_pad)

    return out_flat[:B * N, :dim_V].reshape(B, N, dim_V)


def sab_reference(x, params, num_heads):
    """Pure-JAX reference mirroring the PyTorch MAB forward (ln=False)."""
    dim_V = params["wq"].shape[1]
    q = x @ params["wq"] + params["bq"]
    k = x @ params["wk"] + params["bk"]
    v = x @ params["wv"] + params["bv"]
    ds = dim_V // num_heads
    outs = []
    for h in range(num_heads):
        qh = q[..., h * ds:(h + 1) * ds]
        kh = k[..., h * ds:(h + 1) * ds]
        vh = v[..., h * ds:(h + 1) * ds]
        s = jnp.einsum("bnd,bmd->bnm", qh, kh) / math.sqrt(dim_V)
        a = jax.nn.softmax(s, axis=-1)
        outs.append(qh + jnp.einsum("bnm,bmd->bnd", a, vh))
    o = jnp.concatenate(outs, axis=-1)
    o = o + jax.nn.relu(o @ params["wo"] + params["bo"])
    return o


def init_params(key, dim_in, dim_out):
    ks = jax.random.split(key, 8)
    s_in = 1.0 / math.sqrt(dim_in)
    s_v = 1.0 / math.sqrt(dim_out)
    return {
        "wq": jax.random.uniform(ks[0], (dim_in, dim_out), jnp.float32, -s_in, s_in),
        "bq": jax.random.uniform(ks[1], (1, dim_out), jnp.float32, -s_in, s_in),
        "wk": jax.random.uniform(ks[2], (dim_in, dim_out), jnp.float32, -s_in, s_in),
        "bk": jax.random.uniform(ks[3], (1, dim_out), jnp.float32, -s_in, s_in),
        "wv": jax.random.uniform(ks[4], (dim_in, dim_out), jnp.float32, -s_in, s_in),
        "bv": jax.random.uniform(ks[5], (1, dim_out), jnp.float32, -s_in, s_in),
        "wo": jax.random.uniform(ks[6], (dim_out, dim_out), jnp.float32, -s_v, s_v),
        "bo": jax.random.uniform(ks[7], (1, dim_out), jnp.float32, -s_v, s_v),
    }


if __name__ == "__main__":
    B, N, dim_in, dim_out, num_heads = 2, 8, 16, 32, 4

    key = jax.random.PRNGKey(0)
    kx, kp = jax.random.split(key)
    x = jax.random.normal(kx, (B, N, dim_in), dtype=jnp.float32)
    params = init_params(kp, dim_in, dim_out)

    out = sab_forward(x, params, num_heads)
    jax.block_until_ready(out)

    ref = sab_reference(x, params, num_heads)
    assert out.shape == (B, N, dim_out), out.shape
    err = float(jnp.max(jnp.abs(out - ref)))
    assert jnp.allclose(out, ref, atol=2e-4, rtol=2e-4), (
        "mismatch vs reference, max abs diff = %e" % err)

    print("KERNEL_OK")
</pallas_src>

<mosaic_0001>
module attributes {stable_mosaic.version = 11 : i64} {
  func.func @_sab_kernel(%arg0: i32, %arg1: memref<8x16xf32, #tpu.memory_space<vmem>>, %arg2: memref<16x1536xf32, #tpu.memory_space<vmem>>, %arg3: memref<1x1536xf32, #tpu.memory_space<vmem>>, %arg4: memref<512x128xf32, #tpu.memory_space<vmem>>, %arg5: memref<512x128xf32, #tpu.memory_space<vmem>>, %arg6: memref<1x128xf32, #tpu.memory_space<vmem>>, %arg7: memref<8x128xf32, #tpu.memory_space<vmem>>) attributes {dimension_semantics = [#tpu.dimension_semantics<parallel>], iteration_bounds = array<i64: 2>, scalar_prefetch = 0 : i64, scratch_operands = 0 : i64, tpu.core_type = #tpu.core_type<tc>, window_params = [{transform_indices = @transform_0, window_bounds = array<i64: 8, 16>}, {pipeline_mode = #tpu.pipeline_mode<synchronous>, transform_indices = @transform_1, window_bounds = array<i64: 16, 1536>}, {pipeline_mode = #tpu.pipeline_mode<synchronous>, transform_indices = @transform_2, window_bounds = array<i64: 1, 1536>}, {pipeline_mode = #tpu.pipeline_mode<synchronous>, transform_indices = @transform_3, window_bounds = array<i64: 512, 128>}, {pipeline_mode = #tpu.pipeline_mode<synchronous>, transform_indices = @transform_4, window_bounds = array<i64: 512, 128>}, {pipeline_mode = #tpu.pipeline_mode<synchronous>, transform_indices = @transform_5, window_bounds = array<i64: 1, 128>}, {transform_indices = @transform_6, window_bounds = array<i64: 8, 128>}]} {
    %c0 = arith.constant 0 : index
    %c0_0 = arith.constant 0 : index
    %0 = vector.load %arg1[%c0, %c0_0] : memref<8x16xf32, #tpu.memory_space<vmem>>, vector<8x16xf32>
    %c0_1 = arith.constant 0 : index
    %c0_2 = arith.constant 0 : index
    %1 = vector.load %arg2[%c0_1, %c0_2] : memref<16x1536xf32, #tpu.memory_space<vmem>>, vector<16x1536xf32>
    %cst = arith.constant dense<0.000000e+00> : vector<8x1536xf32>
    %2 = tpu.matmul %0, %1, %cst {dimension_numbers = #tpu.dot_dimension_numbers<[1], [0], [0], [1], [0, 0, 1, 1], [], []>} : vector<8x16xf32>, vector<16x1536xf32>, vector<8x1536xf32> -> vector<8x1536xf32>
    %c0_3 = arith.constant 0 : index
    %c0_4 = arith.constant 0 : index
    %3 = vector.load %arg3[%c0_3, %c0_4] : memref<1x1536xf32, #tpu.memory_space<vmem>>, vector<1x1536xf32>
    %4 = vector.broadcast %3 : vector<1x1536xf32> to vector<8x1536xf32>
    %5 = arith.addf %2, %4 : vector<8x1536xf32>
    %6 = vector.extract_strided_slice %5 {offsets = [0, 0], sizes = [8, 128], strides = [1, 1]} : vector<8x1536xf32> to vector<8x128xf32>
    %7 = vector.shape_cast %6 : vector<8x128xf32> to vector<1x8x128xf32>
    %8 = vector.extract_strided_slice %5 {offsets = [0, 512], sizes = [8, 128], strides = [1, 1]} : vector<8x1536xf32> to vector<8x128xf32>
    %9 = vector.shape_cast %8 : vector<8x128xf32> to vector<1x8x128xf32>
    %10 = vector.extract_strided_slice %5 {offsets = [0, 1024], sizes = [8, 128], strides = [1, 1]} : vector<8x1536xf32> to vector<8x128xf32>
    %11 = vector.shape_cast %10 : vector<8x128xf32> to vector<1x8x128xf32>
    "tpu.trace_start"() <{level = 10 : i32, message = "bnd,bmd->bnm"}> : () -> ()
    %cst_5 = arith.constant dense<0.000000e+00> : vector<1x8x8xf32>
    %12 = tpu.matmul %7, %9, %cst_5 {dimension_numbers = #tpu.dot_dimension_numbers<[2], [2], [1], [1], [0, 0, 0, 1, 1, 1], [0], [0]>} : vector<1x8x128xf32>, vector<1x8x128xf32>, vector<1x8x8xf32> -> vector<1x8x8xf32>
    "tpu.trace_stop"() : () -> ()
    %cst_6 = arith.constant dense<0xFF800000> : vector<1x8xf32>
    %13 = vector.multi_reduction <maximumf>, %12, %cst_6 [2] : vector<1x8x8xf32> to vector<1x8xf32>
    %14 = vector.shape_cast %13 : vector<1x8xf32> to vector<1x8x1xf32>
    %15 = vector.broadcast %14 : vector<1x8x1xf32> to vector<1x8x8xf32>
    %16 = arith.subf %12, %15 : vector<1x8x8xf32>
    %17 = math.exp %16 : vector<1x8x8xf32>
    %cst_7 = arith.constant dense<0.000000e+00> : vector<1x8xf32>
    %18 = vector.multi_reduction <add>, %17, %cst_7 [2] : vector<1x8x8xf32> to vector<1x8xf32>
    %19 = vector.shape_cast %18 : vector<1x8xf32> to vector<1x8x1xf32>
    %20 = tpu.reciprocal %19 {approx = true} : vector<1x8x1xf32> -> vector<1x8x1xf32>
    %21 = arith.mulf %19, %20 : vector<1x8x1xf32>
    %cst_8 = arith.constant 2.000000e+00 : f32
    %22 = vector.broadcast %cst_8 : f32 to vector<1x8x1xf32>
    %23 = arith.subf %22, %21 : vector<1x8x1xf32>
    %24 = arith.mulf %20, %23 : vector<1x8x1xf32>
    %25 = vector.broadcast %24 : vector<1x8x1xf32> to vector<1x8x8xf32>
    %26 = arith.mulf %17, %25 : vector<1x8x8xf32>
    "tpu.trace_start"() <{level = 10 : i32, message = "bnm,bmd->bnd"}> : () -> ()
    %cst_9 = arith.constant dense<0.000000e+00> : vector<1x8x128xf32>
    %27 = tpu.matmul %26, %11, %cst_9 {dimension_numbers = #tpu.dot_dimension_numbers<[2], [1], [1], [2], [0, 0, 0, 1, 1, 2], [0], [0]>} : vector<1x8x8xf32>, vector<1x8x128xf32>, vector<1x8x128xf32> -> vector<1x8x128xf32>
    "tpu.trace_stop"() : () -> ()
    %28 = arith.addf %7, %27 : vector<1x8x128xf32>
    %29 = vector.shape_cast %28 : vector<1x8x128xf32> to vector<8x128xf32>
    %30 = vector.extract_strided_slice %5 {offsets = [0, 128], sizes = [8, 128], strides = [1, 1]} : vector<8x1536xf32> to vector<8x128xf32>
    %31 = vector.shape_cast %30 : vector<8x128xf32> to vector<1x8x128xf32>
    %32 = vector.extract_strided_slice %5 {offsets = [0, 640], sizes = [8, 128], strides = [1, 1]} : vector<8x1536xf32> to vector<8x128xf32>
    %33 = vector.shape_cast %32 : vector<8x128xf32> to vector<1x8x128xf32>
    %34 = vector.extract_strided_slice %5 {offsets = [0, 1152], sizes = [8, 128], strides = [1, 1]} : vector<8x1536xf32> to vector<8x128xf32>
    %35 = vector.shape_cast %34 : vector<8x128xf32> to vector<1x8x128xf32>
    "tpu.trace_start"() <{level = 10 : i32, message = "bnd,bmd->bnm"}> : () -> ()
    %cst_10 = arith.constant dense<0.000000e+00> : vector<1x8x8xf32>
    %36 = tpu.matmul %31, %33, %cst_10 {dimension_numbers = #tpu.dot_dimension_numbers<[2], [2], [1], [1], [0, 0, 0, 1, 1, 1], [0], [0]>} : vector<1x8x128xf32>, vector<1x8x128xf32>, vector<1x8x8xf32> -> vector<1x8x8xf32>
    "tpu.trace_stop"() : () -> ()
    %cst_11 = arith.constant dense<0xFF800000> : vector<1x8xf32>
    %37 = vector.multi_reduction <maximumf>, %36, %cst_11 [2] : vector<1x8x8xf32> to vector<1x8xf32>
    %38 = vector.shape_cast %37 : vector<1x8xf32> to vector<1x8x1xf32>
    %39 = vector.broadcast %38 : vector<1x8x1xf32> to vector<1x8x8xf32>
    %40 = arith.subf %36, %39 : vector<1x8x8xf32>
    %41 = math.exp %40 : vector<1x8x8xf32>
    %cst_12 = arith.constant dense<0.000000e+00> : vector<1x8xf32>
    %42 = vector.multi_reduction <add>, %41, %cst_12 [2] : vector<1x8x8xf32> to vector<1x8xf32>
    %43 = vector.shape_cast %42 : vector<1x8xf32> to vector<1x8x1xf32>
    %44 = tpu.reciprocal %43 {approx = true} : vector<1x8x1xf32> -> vector<1x8x1xf32>
    %45 = arith.mulf %43, %44 : vector<1x8x1xf32>
    %cst_13 = arith.constant 2.000000e+00 : f32
    %46 = vector.broadcast %cst_13 : f32 to vector<1x8x1xf32>
    %47 = arith.subf %46, %45 : vector<1x8x1xf32>
    %48 = arith.mulf %44, %47 : vector<1x8x1xf32>
    %49 = vector.broadcast %48 : vector<1x8x1xf32> to vector<1x8x8xf32>
    %50 = arith.mulf %41, %49 : vector<1x8x8xf32>
    "tpu.trace_start"() <{level = 10 : i32, message = "bnm,bmd->bnd"}> : () -> ()
    %cst_14 = arith.constant dense<0.000000e+00> : vector<1x8x128xf32>
    %51 = tpu.matmul %50, %35, %cst_14 {dimension_numbers = #tpu.dot_dimension_numbers<[2], [1], [1], [2], [0, 0, 0, 1, 1, 2], [0], [0]>} : vector<1x8x8xf32>, vector<1x8x128xf32>, vector<1x8x128xf32> -> vector<1x8x128xf32>
    "tpu.trace_stop"() : () -> ()
    %52 = arith.addf %31, %51 : vector<1x8x128xf32>
    %53 = vector.shape_cast %52 : vector<1x8x128xf32> to vector<8x128xf32>
    %54 = vector.extract_strided_slice %5 {offsets = [0, 256], sizes = [8, 128], strides = [1, 1]} : vector<8x1536xf32> to vector<8x128xf32>
    %55 = vector.shape_cast %54 : vector<8x128xf32> to vector<1x8x128xf32>
    %56 = vector.extract_strided_slice %5 {offsets = [0, 768], sizes = [8, 128], strides = [1, 1]} : vector<8x1536xf32> to vector<8x128xf32>
    %57 = vector.shape_cast %56 : vector<8x128xf32> to vector<1x8x128xf32>
    %58 = vector.extract_strided_slice %5 {offsets = [0, 1280], sizes = [8, 128], strides = [1, 1]} : vector<8x1536xf32> to vector<8x128xf32>
    %59 = vector.shape_cast %58 : vector<8x128xf32> to vector<1x8x128xf32>
    "tpu.trace_start"() <{level = 10 : i32, message = "bnd,bmd->bnm"}> : () -> ()
    %cst_15 = arith.constant dense<0.000000e+00> : vector<1x8x8xf32>
    %60 = tpu.matmul %55, %57, %cst_15 {dimension_numbers = #tpu.dot_dimension_numbers<[2], [2], [1], [1], [0, 0, 0, 1, 1, 1], [0], [0]>} : vector<1x8x128xf32>, vector<1x8x128xf32>, vector<1x8x8xf32> -> vector<1x8x8xf32>
    "tpu.trace_stop"() : () -> ()
    %cst_16 = arith.constant dense<0xFF800000> : vector<1x8xf32>
    %61 = vector.multi_reduction <maximumf>, %60, %cst_16 [2] : vector<1x8x8xf32> to vector<1x8xf32>
    %62 = vector.shape_cast %61 : vector<1x8xf32> to vector<1x8x1xf32>
    %63 = vector.broadcast %62 : vector<1x8x1xf32> to vector<1x8x8xf32>
    %64 = arith.subf %60, %63 : vector<1x8x8xf32>
    %65 = math.exp %64 : vector<1x8x8xf32>
    %cst_17 = arith.constant dense<0.000000e+00> : vector<1x8xf32>
    %66 = vector.multi_reduction <add>, %65, %cst_17 [2] : vector<1x8x8xf32> to vector<1x8xf32>
    %67 = vector.shape_cast %66 : vector<1x8xf32> to vector<1x8x1xf32>
    %68 = tpu.reciprocal %67 {approx = true} : vector<1x8x1xf32> -> vector<1x8x1xf32>
    %69 = arith.mulf %67, %68 : vector<1x8x1xf32>
    %cst_18 = arith.constant 2.000000e+00 : f32
    %70 = vector.broadcast %cst_18 : f32 to vector<1x8x1xf32>
    %71 = arith.subf %70, %69 : vector<1x8x1xf32>
    %72 = arith.mulf %68, %71 : vector<1x8x1xf32>
    %73 = vector.broadcast %72 : vector<1x8x1xf32> to vector<1x8x8xf32>
    %74 = arith.mulf %65, %73 : vector<1x8x8xf32>
    "tpu.trace_start"() <{level = 10 : i32, message = "bnm,bmd->bnd"}> : () -> ()
    %cst_19 = arith.constant dense<0.000000e+00> : vector<1x8x128xf32>
    %75 = tpu.matmul %74, %59, %cst_19 {dimension_numbers = #tpu.dot_dimension_numbers<[2], [1], [1], [2], [0, 0, 0, 1, 1, 2], [0], [0]>} : vector<1x8x8xf32>, vector<1x8x128xf32>, vector<1x8x128xf32> -> vector<1x8x128xf32>
    "tpu.trace_stop"() : () -> ()
    %76 = arith.addf %55, %75 : vector<1x8x128xf32>
    %77 = vector.shape_cast %76 : vector<1x8x128xf32> to vector<8x128xf32>
    %78 = vector.extract_strided_slice %5 {offsets = [0, 384], sizes = [8, 128], strides = [1, 1]} : vector<8x1536xf32> to vector<8x128xf32>
    %79 = vector.shape_cast %78 : vector<8x128xf32> to vector<1x8x128xf32>
    %80 = vector.extract_strided_slice %5 {offsets = [0, 896], sizes = [8, 128], strides = [1, 1]} : vector<8x1536xf32> to vector<8x128xf32>
    %81 = vector.shape_cast %80 : vector<8x128xf32> to vector<1x8x128xf32>
    %82 = vector.extract_strided_slice %5 {offsets = [0, 1408], sizes = [8, 128], strides = [1, 1]} : vector<8x1536xf32> to vector<8x128xf32>
    %83 = vector.shape_cast %82 : vector<8x128xf32> to vector<1x8x128xf32>
    "tpu.trace_start"() <{level = 10 : i32, message = "bnd,bmd->bnm"}> : () -> ()
    %cst_20 = arith.constant dense<0.000000e+00> : vector<1x8x8xf32>
    %84 = tpu.matmul %79, %81, %cst_20 {dimension_numbers = #tpu.dot_dimension_numbers<[2], [2], [1], [1], [0, 0, 0, 1, 1, 1], [0], [0]>} : vector<1x8x128xf32>, vector<1x8x128xf32>, vector<1x8x8xf32> -> vector<1x8x8xf32>
    "tpu.trace_stop"() : () -> ()
    %cst_21 = arith.constant dense<0xFF800000> : vector<1x8xf32>
    %85 = vector.multi_reduction <maximumf>, %84, %cst_21 [2] : vector<1x8x8xf32> to vector<1x8xf32>
    %86 = vector.shape_cast %85 : vector<1x8xf32> to vector<1x8x1xf32>
    %87 = vector.broadcast %86 : vector<1x8x1xf32> to vector<1x8x8xf32>
    %88 = arith.subf %84, %87 : vector<1x8x8xf32>
    %89 = math.exp %88 : vector<1x8x8xf32>
    %cst_22 = arith.constant dense<0.000000e+00> : vector<1x8xf32>
    %90 = vector.multi_reduction <add>, %89, %cst_22 [2] : vector<1x8x8xf32> to vector<1x8xf32>
    %91 = vector.shape_cast %90 : vector<1x8xf32> to vector<1x8x1xf32>
    %92 = tpu.reciprocal %91 {approx = true} : vector<1x8x1xf32> -> vector<1x8x1xf32>
    %93 = arith.mulf %91, %92 : vector<1x8x1xf32>
    %cst_23 = arith.constant 2.000000e+00 : f32
    %94 = vector.broadcast %cst_23 : f32 to vector<1x8x1xf32>
    %95 = arith.subf %94, %93 : vector<1x8x1xf32>
    %96 = arith.mulf %92, %95 : vector<1x8x1xf32>
    %97 = vector.broadcast %96 : vector<1x8x1xf32> to vector<1x8x8xf32>
    %98 = arith.mulf %89, %97 : vector<1x8x8xf32>
    "tpu.trace_start"() <{level = 10 : i32, message = "bnm,bmd->bnd"}> : () -> ()
    %cst_24 = arith.constant dense<0.000000e+00> : vector<1x8x128xf32>
    %99 = tpu.matmul %98, %83, %cst_24 {dimension_numbers = #tpu.dot_dimension_numbers<[2], [1], [1], [2], [0, 0, 0, 1, 1, 2], [0], [0]>} : vector<1x8x8xf32>, vector<1x8x128xf32>, vector<1x8x128xf32> -> vector<1x8x128xf32>
    "tpu.trace_stop"() : () -> ()
    %100 = arith.addf %79, %99 : vector<1x8x128xf32>
    %101 = vector.shape_cast %100 : vector<1x8x128xf32> to vector<8x128xf32>
    %102 = tpu.concatenate %29, %53, %77, %101 in 1 : vector<8x128xf32>, vector<8x128xf32>, vector<8x128xf32>, vector<8x128xf32> -> vector<8x512xf32>
    %c0_25 = arith.constant 0 : index
    %c0_26 = arith.constant 0 : index
    %103 = vector.load %arg5[%c0_25, %c0_26] : memref<512x128xf32, #tpu.memory_space<vmem>>, vector<512x128xf32>
    %cst_27 = arith.constant dense<0.000000e+00> : vector<8x128xf32>
    %104 = tpu.matmul %102, %103, %cst_27 {dimension_numbers = #tpu.dot_dimension_numbers<[1], [0], [0], [1], [0, 0, 1, 1], [], []>} : vector<8x512xf32>, vector<512x128xf32>, vector<8x128xf32> -> vector<8x128xf32>
    %c0_28 = arith.constant 0 : index
    %c0_29 = arith.constant 0 : index
    %105 = vector.load %arg4[%c0_28, %c0_29] : memref<512x128xf32, #tpu.memory_space<vmem>>, vector<512x128xf32>
    %cst_30 = arith.constant dense<0.000000e+00> : vector<8x128xf32>
    %106 = tpu.matmul %102, %105, %cst_30 {dimension_numbers = #tpu.dot_dimension_numbers<[1], [0], [0], [1], [0, 0, 1, 1], [], []>} : vector<8x512xf32>, vector<512x128xf32>, vector<8x128xf32> -> vector<8x128xf32>
    %c0_31 = arith.constant 0 : index
    %c0_32 = arith.constant 0 : index
    %107 = vector.load %arg6[%c0_31, %c0_32] : memref<1x128xf32, #tpu.memory_space<vmem>>, vector<1x128xf32>
    %108 = vector.broadcast %107 : vector<1x128xf32> to vector<8x128xf32>
    %109 = arith.addf %106, %108 : vector<8x128xf32>
    %cst_33 = arith.constant 0.000000e+00 : f32
    %110 = vector.broadcast %cst_33 : f32 to vector<8x128xf32>
    %111 = arith.maximumf %109, %110 : vector<8x128xf32>
    %112 = arith.addf %104, %111 : vector<8x128xf32>
    %c0_34 = arith.constant 0 : index
    %c0_35 = arith.constant 0 : index
    %113 = vector.load %arg7[%c0_34, %c0_35] : memref<8x128xf32, #tpu.memory_space<vmem>>, vector<8x128xf32>
    tpu.vector_store %arg7[%c0_34, %c0_35], %112 {strides = array<i32>} : memref<8x128xf32, #tpu.memory_space<vmem>>, vector<8x128xf32>,
    return
  }
  func.func @transform_0(%arg0: i32) -> (i32, i32) {
    %c0_i32 = arith.constant 0 : i32
    %c0_i32_0 = arith.constant 0 : i32
    return %arg0, %c0_i32 : i32, i32
  }
  func.func @transform_1(%arg0: i32) -> (i32, i32) {
    %c0_i32 = arith.constant 0 : i32
    %c0_i32_0 = arith.constant 0 : i32
    %c0_i32_1 = arith.constant 0 : i32
    return %c0_i32, %c0_i32_0 : i32, i32
  }
  func.func @transform_2(%arg0: i32) -> (i32, i32) {
    %c0_i32 = arith.constant 0 : i32
    %c0_i32_0 = arith.constant 0 : i32
    %c0_i32_1 = arith.constant 0 : i32
    return %c0_i32, %c0_i32_0 : i32, i32
  }
  func.func @transform_3(%arg0: i32) -> (i32, i32) {
    %c0_i32 = arith.constant 0 : i32
    %c0_i32_0 = arith.constant 0 : i32
    %c0_i32_1 = arith.constant 0 : i32
    return %c0_i32, %c0_i32_0 : i32, i32
  }
  func.func @transform_4(%arg0: i32) -> (i32, i32) {
    %c0_i32 = arith.constant 0 : i32
    %c0_i32_0 = arith.constant 0 : i32
    %c0_i32_1 = arith.constant 0 : i32
    return %c0_i32, %c0_i32_0 : i32, i32
  }
  func.func @transform_5(%arg0: i32) -> (i32, i32) {
    %c0_i32 = arith.constant 0 : i32
    %c0_i32_0 = arith.constant 0 : i32
    %c0_i32_1 = arith.constant 0 : i32
    return %c0_i32, %c0_i32_0 : i32, i32
  }
  func.func @transform_6(%arg0: i32) -> (i32, i32) {
    %c0_i32 = arith.constant 0 : i32
    %c0_i32_0 = arith.constant 0 : i32
    return %arg0, %c0_i32 : i32, i32
  }
}

</mosaic_0001>

<bundles_post_ra>
// kernel: sab_forward.1
= control target key start
LH: loop header
LB: loop body
LE: loop exit
PB: predicated region body
PF: predicated region fallthrough
CT: control target
= control target key end

     0   :  { %s1217_s21 = smov 0   ;;  %s1778_s0 = inlined_call_operand.vmem [shape: f32[16,16], index: 0, kind: input, shape index: {}]   ;;  %s1779_s1 = inlined_call_operand.vmem [shape: f32[16,1536], index: 1, kind: input, shape index: {}]   ;;  %s1780_s2 = inlined_call_operand.vmem [shape: f32[1,1536], index: 2, kind: input, shape index: {}]   ;;  %s1781_s3 = inlined_call_operand.vmem [shape: f32[512,128], index: 3, kind: input, shape index: {}]   ;;  %s1782_s4 = inlined_call_operand.vmem [shape: f32[512,128], index: 4, kind: input, shape index: {}]   ;;  %s1783_s5 = inlined_call_operand.vmem [shape: f32[1,128], index: 5, kind: input, shape index: {}]   ;;  %s1784_s6 = inlined_call_operand.vmem [shape: f32[16,128], index: 6, kind: output, shape index: {}]  }
   0x1 LB: > { %s1124_s22 = sadd.s32 4294967295, %s1180_s21   ;;  %p1128_p0 = scmp.ge.s32.totalorder %s1180_s21, 1  ;;  %s1180_s21 = sphi %s1217_s21, %s16_s21  }
   0x2   : > { %p211_p1 = scmp.lt.s32.totalorder %s1180_s21, 3 }
   0x4   : > { %p212_p2 = pnand %p1128_p0, %p211_p1 }
   0x5   : > { %p239_p3 = scmp.lt.s32.totalorder (!%p212_p2), %s1124_s22, 1 }
   0x6   : > { %215 = sbr.rel (%p212_p2) target bundleno = 841 (0x349), region = 44 }
   0xb   : > { %v261_v0 = vld [vmem:[%s1779_s1 + $0x68] sm:$0xff]  ;;  %v263_v2 = vld [vmem:[%s1779_s1 + $0x78] sm:$0xff]  ;;  %v260_v3 = vld [vmem:[%s1779_s1 + $0x60] sm:$0xff]  ;;  %s1786_s22 = smov (!%p239_p3, %s1124_s22), 1  ;;  %vm300_vm0 = vcmask 130048   ;;  %vm564_vm1 = vcmask 64512  }
   0xc   : > { %v249_v1 = vld [vmem:[%s1779_s1 + $0x8] sm:$0xff]  ;;  %338 = vmatpush.msra.mxu1 %v261_v0  ;;  %378 = vmatpush.msra.mxu3 %v263_v2  ;;  %v251_v4 = vld [vmem:[%s1779_s1 + $0x18] sm:$0xff]  ;;  %v248_v5 = vld [vmem:[%s1779_s1] sm:$0xff]  ;;  %s1129_s23 = sshll.u32 %s1786_s22, 3 }
   0xd   : > { %318 = vmatpush.msra.mxu0 %v260_v3  ;;  %v262_v6 = vld [vmem:[%s1779_s1 + $0x70] sm:$0xff]  ;;  %v265_v7 = vld [vmem:[%s1779_s1 + $0x88] sm:$0xff]  ;;  %v267_v9 = vld [vmem:[%s1779_s1 + $0x98] sm:$0xff]  ;;  %s242_s26 = scalar_lea.vmem %s1778_s0, %s1129_s23  ;;  %s246_s20 = scalar_lea.vmem %s1784_s6, %s1129_s23 }
   0xe   : > { %339 = vmatpush.msra.mxu1 %v249_v1  ;;  %379 = vmatpush.msra.mxu3 %v251_v4  ;;  %v250_v8 = vld [vmem:[%s1779_s1 + $0x10] sm:$0xff]  ;;  %v264_v10 = vld [vmem:[%s1779_s1 + $0x80] sm:$0xff]  ;;  %v253_v12 = vld [vmem:[%s1779_s1 + $0x28] sm:$0xff] }
   0xf   : > { %319 = vmatpush.msra.mxu0 %v248_v5  ;;  %358 = vmatpush.msra.mxu2 %v262_v6  ;;  %v1266_v11 = vld [vmem:[%s242_s26] sm:$0xff]  ;;  %v255_v13 = vld [vmem:[%s1779_s1 + $0x38] sm:$0xff]  ;;  %v266_v15 = vld [vmem:[%s1779_s1 + $0x90] sm:$0xff] }
  0x10   : > { %418 = vmatpush.msrb.mxu1 %v265_v7  ;;  %458 = vmatpush.msrb.mxu3 %v267_v9  ;;  %v252_v14 = vld [vmem:[%s1779_s1 + $0x20] sm:$0xff]  ;;  %v254_v16 = vld [vmem:[%s1779_s1 + $0x30] sm:$0xff]  ;;  %v269_v46 = vld [vmem:[%s1779_s1 + $0xa8] sm:$0xff] }
  0x11   : > { %359 = vmatpush.msra.mxu2 %v250_v8  ;;  %398 = vmatpush.msrb.mxu0 %v264_v10  ;;  %v270_v17 = vld [vmem:[%s1779_s1 + $0xb0] sm:$0xff]  ;;  %v268_v19 = vld [vmem:[%s1779_s1 + $0xa0] sm:$0xff]  ;;  %v1336_v47 = vld [vmem:[%s1780_s2 + $0x8] sm:$0xf] }
  0x12   : > { %1132 = vmatmul.msk.f32.vlgmr.msra.gmra.mxu1 %vm300_vm0, %v1266_v11  ;;  %1134 = vmatmul.msk.f32.vlgmr.msra.gmra.mxu3 %vm300_vm0, %v1266_v11  ;;  %v258_v18 = vld [vmem:[%s1779_s1 + $0x50] sm:$0xff]  ;;  %v256_v20 = vld [vmem:[%s1779_s1 + $0x40] sm:$0xff]  ;;  %v284_v48 = vperm.slane %v1336_v47, 0  ;;  %v286_v50 = vperm.slane %v1336_v47, 2  ;;  %v257_v53 = vld [vmem:[%s1779_s1 + $0x48] sm:$0xff] }
  0x13   : > { %1131 = vmatmul.msk.f32.vlgmr.msra.gmra.mxu0 %vm300_vm0, %v1266_v11  ;;  %1133 = vmatmul.msk.f32.vlgmr.msra.gmra.mxu2 %vm300_vm0, %v1266_v11  ;;  %v272_v23 = vld [vmem:[%s1780_s2] sm:$0xff]  ;;  %v271_v63 = vld [vmem:[%s1779_s1 + $0xb8] sm:$0xff] }
  0x14   : > { %419 = vmatpush.msrb.mxu1 %v253_v12  ;;  %459 = vmatpush.msrb.mxu3 %v255_v13  ;;  %v281_v24 = vperm.slane %v272_v23, 5  ;;  %v280_v26 = vperm.slane %v272_v23, 4  ;;  %v276_v27 = vperm.slane %v272_v23, 0  ;;  %v277_v29 = vperm.slane %v272_v23, 1  ;;  %v259_v0 = vld [vmem:[%s1779_s1 + $0x58] sm:$0xff] }
  0x15   : > { %399 = vmatpush.msrb.mxu0 %v252_v14  ;;  %438 = vmatpush.msrb.mxu2 %v266_v15  ;;  %v283_v35 = vperm.slane %v272_v23, 7  ;;  %v282_v37 = vperm.slane %v272_v23, 6  ;;  %v278_v39 = vperm.slane %v272_v23, 2  ;;  %v279_v42 = vperm.slane %v272_v23, 3 }
  0x16   : > { %498 = vmatpush.msra.mxu1 %v269_v46  ;;  %538 = vmatpush.msra.mxu3 %v271_v63  ;;  %v885_v46 = vld [vmem:[%s1781_s3 + $0x160] sm:$0xff] }
  0x17   : > { %439 = vmatpush.msrb.mxu2 %v254_v16  ;;  %478 = vmatpush.msra.mxu0 %v268_v19 }
  0x18   : > { %499 = vmatpush.msra.mxu1 %v257_v53  ;;  %539 = vmatpush.msra.mxu3 %v259_v0  ;;  %v883_v53 = vld [vmem:[%s1781_s3 + $0x150] sm:$0xff]  ;;  %v902_v0 = vld [vmem:[%s1781_s3 + $0x1e8] sm:$0xff] }
  0x19   : > { %518 = vmatpush.msra.mxu2 %v270_v17  ;;  %479 = vmatpush.msra.mxu0 %v256_v20 }
  0x1a   : > { %1136 = vmatmul.msk.f32.vlgmr.msrb.gmra.mxu1 %vm300_vm0, %v1266_v11  ;;  %1138 = vmatmul.msk.f32.vlgmr.msrb.gmra.mxu3 %vm300_vm0, %v1266_v11 }
  0x1b   : > { %1135 = vmatmul.msk.f32.vlgmr.msrb.gmra.mxu0 %vm300_vm0, %v1266_v11  ;;  %1137 = vmatmul.msk.f32.vlgmr.msrb.gmra.mxu2 %vm300_vm0, %v1266_v11 }
  0x1c   : > { %519 = vmatpush.msra.mxu2 %v258_v18 }
  0x22   : > { %1140 = vmatmul.msk.f32.vlgmr.msra.gmra.mxu1 %vm300_vm0, %v1266_v11  ;;  %1142 = vmatmul.msk.f32.vlgmr.msra.gmra.mxu3 %vm300_vm0, %v1266_v11 }
  0x23   : > { %1141 = vmatmul.msk.f32.vlgmr.msra.gmra.mxu2 %vm300_vm0, %v1266_v11  ;;  %1139 = vmatmul.msk.f32.vlgmr.msra.gmra.mxu0 %vm300_vm0, %v1266_v11 }
  0x8f   : > { %v341_v21 = vpop.f32.mrf.mxu1 }
  0x90   : > { %v321_v22 = vpop.f32.mrf.mxu0  ;;  %v1320_v36 = vadd.f32 %v341_v21, %v277_v29  ;;  %v285_v21 = vperm.slane %v1336_v47, 1  ;;  %v855_v29 = vld [vmem:[%s1781_s3 + $0x70] sm:$0xff] }
  0x91   : > { %v1318_v34 = vadd.f32 %v321_v22, %v276_v27 }
  0x95   : > { %v381_v25 = vpop.f32.mrf.mxu3 }
  0x96   : > { %v361_v28 = vpop.f32.mrf.mxu2  ;;  %v1326_v45 = vadd.f32 %v381_v25, %v279_v42  ;;  %v851_v42 = vld [vmem:[%s1781_s3 + $0x50] sm:$0xff] }
  0x97   : > { %v421_v30 = vpop.f32.mrf.mxu1  ;;  %v1324_v44 = vadd.f32 %v361_v28, %v278_v39  ;;  %v856_v28 = vld [vmem:[%s1781_s3 + $0x78] sm:$0xff] }
  0x98   : > { %v422_v31 = vadd.f32 %v421_v30, %v281_v24  ;;  %v401_v32 = vpop.f32.mrf.mxu0  ;;  %v287_v24 = vperm.slane %v1336_v47, 3  ;;  %v854_v30 = vld [vmem:[%s1781_s3 + $0x68] sm:$0xff] }
  0x99   : > { %v402_v33 = vadd.f32 %v401_v32, %v280_v26  ;;  %v888_v32 = vld [vmem:[%s1781_s3 + $0x178] sm:$0xff]  ;;  %v850_v47 = vld [vmem:[%s1781_s3 + $0x48] sm:$0xff] }
  0x9a   : > { %618 = vmatpush.xpose.msrb.mxu2 %v422_v31  ;;  %v853_v31 = vld [vmem:[%s1781_s3 + $0x60] sm:$0xff] }
  0x9b   : > { %559 = vmatpush.xpose.msrb.mxu0 %v402_v33  ;;  %v887_v33 = vld [vmem:[%s1781_s3 + $0x170] sm:$0xff] }
  0x9d   : > { %619 = vmatmul.f32.vlgmr.msrb.gmra.mxu2 %v1320_v36  ;;  %v461_v38 = vpop.f32.mrf.mxu3 }
  0x9e   : > { %v462_v40 = vadd.f32 %v461_v38, %v283_v35  ;;  %560 = vmatmul.f32.vlgmr.msrb.gmra.mxu0 %v1318_v34  ;;  %v441_v41 = vpop.f32.mrf.mxu2 }
  0x9f   : > { %v442_v43 = vadd.f32 %v441_v41, %v282_v37  ;;  %v501_v22 = vpop.f32.mrf.mxu1  ;;  %v852_v37 = vld [vmem:[%s1781_s3 + $0x58] sm:$0xff] }
  0xa0   : > { %734 = vmatpush.xpose.msra.mxu2 %v462_v40  ;;  %v481_v49 = vpop.f32.mrf.mxu0  ;;  %v502_v23 = vadd.f32 %v501_v22, %v285_v21  ;;  %v886_v40 = vld [vmem:[%s1781_s3 + $0x168] sm:$0xff] }
  0xa1   : > { %676 = vmatpush.xpose.msra.mxu0 %v442_v43  ;;  %v482_v51 = vadd.f32 %v481_v49, %v284_v48  ;;  %v884_v49 = vld [vmem:[%s1781_s3 + $0x158] sm:$0xff]  ;;  %v898_v22 = vld [vmem:[%s1781_s3 + $0x1c8] sm:$0xff] }
  0xa2   : > { %655 = vmatpush.msrb.mxu3 %v502_v23  ;;  %v878_v23 = vld [vmem:[%s1781_s3 + $0x128] sm:$0xff] }
  0xa3   : > { %597 = vmatpush.msrb.mxu1 %v482_v51 }
  0xa4   : > { %949 = vmatpush.msrb.mxu2 %v888_v32  ;;  %v896_v32 = vld [vmem:[%s1781_s3 + $0x1b8] sm:$0xff] }
  0xa5   : > { %735 = vmatmul.f32.vlgmr.msra.gmra.mxu2 %v1326_v45  ;;  %v541_v25 = vpop.f32.mrf.mxu3  ;;  %909 = vmatpush.msrb.mxu0 %v856_v28  ;;  %v877_v28 = vld [vmem:[%s1781_s3 + $0x120] sm:$0xff] }
  0xa6   : > { %677 = vmatmul.f32.vlgmr.msra.gmra.mxu0 %v1324_v44  ;;  %v521_v52 = vpop.f32.mrf.mxu2  ;;  %v542_v26 = vadd.f32 %v541_v25, %v287_v24  ;;  %950 = vmatpush.msrb.mxu2 %v887_v33  ;;  %v870_v24 = vld [vmem:[%s1781_s3 + $0xe8] sm:$0xff]  ;;  %v868_v33 = vld [vmem:[%s1781_s3 + $0xd8] sm:$0xff] }
  0xa7   : > { %v522_v54 = vadd.f32 %v521_v52, %v286_v50  ;;  %910 = vmatpush.msrb.mxu0 %v855_v29  ;;  %v849_v50 = vld [vmem:[%s1781_s3 + $0x40] sm:$0xff]  ;;  %v904_v52 = vld [vmem:[%s1781_s3 + $0x1f8] sm:$0xff]  ;;  %v842_v25 = vld [vmem:[%s1781_s3 + $0x8] sm:$0xff] }
  0xa8   : > { %771 = vmatpush.msra.mxu3 %v542_v26  ;;  %951 = vmatpush.msrb.mxu2 %v886_v40  ;;  %v869_v29 = vld [vmem:[%s1781_s3 + $0xe0] sm:$0xff]  ;;  %v894_v40 = vld [vmem:[%s1781_s3 + $0x1a8] sm:$0xff] }
  0xa9   : > { %713 = vmatpush.msra.mxu1 %v522_v54  ;;  %911 = vmatpush.msrb.mxu0 %v854_v30  ;;  %v841_v30 = vld [vmem:[%s1781_s3] sm:$0xff] }
  0xaa   : > { %952 = vmatpush.msrb.mxu2 %v885_v46  ;;  %v893_v46 = vld [vmem:[%s1781_s3 + $0x1a0] sm:$0xff] }
  0xab   : > { %912 = vmatpush.msrb.mxu0 %v853_v31 }
  0xac   : > { %953 = vmatpush.msrb.mxu2 %v884_v49  ;;  %v789_v49 = vld [vmem:[%s1782_s4 + $0x60] sm:$0xff] }
  0xad   : > { %913 = vmatpush.msrb.mxu0 %v852_v37  ;;  %v876_v37 = vld [vmem:[%s1781_s3 + $0x118] sm:$0xff] }
  0xae   : > { %954 = vmatpush.msrb.mxu2 %v883_v53  ;;  %v788_v53 = vld [vmem:[%s1782_s4 + $0x58] sm:$0xff] }
  0xaf   : > { %914 = vmatpush.msrb.mxu0 %v851_v42  ;;  %v866_v42 = vld [vmem:[%s1781_s3 + $0xc8] sm:$0xff] }
  0xb1   : > { %915 = vmatpush.msrb.mxu0 %v850_v47  ;;  %v874_v47 = vld [vmem:[%s1781_s3 + $0x108] sm:$0xff] }
  0xb3   : > { %916 = vmatpush.msrb.mxu0 %v849_v50  ;;  %v892_v50 = vld [vmem:[%s1781_s3 + $0x198] sm:$0xff] }
 0x11b   : > { %v561_v57 = vpop.f32.mrf.mxu0 }
 0x11c   : > { %v565_v60 = vsel %vm564_vm1, %v561_v57, -inf }
 0x120   : > { %v620_v55 = vpop.f32.mrf.mxu2 }
 0x121   : > { %v623_v56 = vsel %vm564_vm1, %v620_v55, -inf }
 0x122   : > { %624 = vmax.xlane.f32.xlu0 %v623_v56 }
 0x123   : > { %v678_v61 = vpop.f32.mrf.mxu0 }
 0x124   : > { %v681_v62 = vsel %vm564_vm1, %v678_v61, -inf }
 0x128   : > { %v736_v58 = vpop.f32.mrf.mxu2 }
 0x129   : > { %v739_v59 = vsel %vm564_vm1, %v736_v58, -inf }
 0x12a   : > { %740 = vmax.xlane.f32.xlu1 %v739_v59  ;;  %566 = vmax.xlane.f32.xlu0 %v565_v60  ;;  %v903_v59 = vld [vmem:[%s1781_s3 + $0x1f0] sm:$0xff]  ;;  %v882_v60 = vld [vmem:[%s1781_s3 + $0x148] sm:$0xff] }
 0x12b   : > { %955 = vmatpush.msrb.mxu2 %v882_v60  ;;  %v862_v60 = vld [vmem:[%s1781_s3 + $0xa8] sm:$0xff] }
 0x132   : > { %682 = vmax.xlane.f32.xlu1 %v681_v62  ;;  %v847_v62 = vld [vmem:[%s1781_s3 + $0x30] sm:$0xff] }
 0x195   : > { %v625_v1 = vpop.xlane.xlu0 %624 }
 0x196   : > { %v626_v2 = vsub.f32 %v620_v55, %v625_v1  ;;  %v848_v55 = vld [vmem:[%s1781_s3 + $0x38] sm:$0xff]  ;;  %v881_v1 = vld [vmem:[%s1781_s3 + $0x140] sm:$0xff] }
 0x197   : > { %917 = vmatpush.msrb.mxu0 %v848_v55  ;;  %956 = vmatpush.msrb.mxu2 %v881_v1  ;;  %v824_v55 = vld [vmem:[%s1782_s4 + $0x178] sm:$0xff] }
 0x198   : > { %v627_v3 = vmul.f32 1.442695, %v626_v2  ;;  %v840_v1 = vld [vmem:[%s1782_s4 + $0x1f8] sm:$0xff] }
 0x199   : > { %918 = vmatpush.msrb.mxu0 %v847_v62  ;;  %v889_v62 = vld [vmem:[%s1781_s3 + $0x180] sm:$0xff] }
 0x19a   : > { %1158 = vpow2.f32 %v627_v3  ;;  %v846_v3 = vld [vmem:[%s1781_s3 + $0x28] sm:$0xff] }
 0x19b   : > { %919 = vmatpush.msrb.mxu0 %v846_v3  ;;  %v821_v3 = vld [vmem:[%s1782_s4 + $0x160] sm:$0xff] }
 0x19d   : > { %v741_v4 = vpop.xlane.xlu1 %740  ;;  %v567_v5 = vpop.xlane.xlu0 %566 }
 0x19e   : > { %v742_v6 = vsub.f32 %v736_v58, %v741_v4  ;;  %v568_v7 = vsub.f32 %v561_v57, %v567_v5  ;;  %v901_v5 = vld [vmem:[%s1781_s3 + $0x1e0] sm:$0xff] }
 0x1a0   : > { %v1159_v8 = vpop.eup %1158  ;;  %v743_v9 = vmul.f32 1.442695, %v742_v6  ;;  %v569_v10 = vmul.f32 1.442695, %v568_v7  ;;  %v880_v6 = vld [vmem:[%s1781_s3 + $0x138] sm:$0xff] }
 0x1a1   : > { %v629_v12 = vsel %vm564_vm1, %v1159_v8, 0.0  ;;  %957 = vmatpush.msrb.mxu2 %v880_v6  ;;  %v784_v6 = vld [vmem:[%s1782_s4 + $0x38] sm:$0xff] }
 0x1a2   : > { %1160 = vpow2.f32 %v743_v9  ;;  %630 = vadd.xlane.f32.xlu2 %v629_v12 }
 0x1a3   : > { %1162 = vpow2.f32 %v569_v10  ;;  %v900_v10 = vld [vmem:[%s1781_s3 + $0x1d8] sm:$0xff] }
 0x1a5   : > { %v683_v13 = vpop.xlane.xlu1 %682 }
 0x1a6   : > { %v684_v14 = vsub.f32 %v678_v61, %v683_v13 }
 0x1a8   : > { %v1358_v15 = vpop.eup %1160  ;;  %v685_v11 = vmul.f32 1.442695, %v684_v14  ;;  %v872_v14 = vld [vmem:[%s1781_s3 + $0xf8] sm:$0xff] }
 0x1a9   : > { %v1360_v16 = vpop.eup %1162  ;;  %v745_v17 = vsel %vm564_vm1, %v1358_v15, 0.0 }
 0x1aa   : > { %1164 = vpow2.f32 %v685_v11  ;;  %746 = vadd.xlane.f32.xlu0 %v745_v17  ;;  %v571_v18 = vsel %vm564_vm1, %v1360_v16, 0.0  ;;  %v844_v11 = vld [vmem:[%s1781_s3 + $0x18] sm:$0xff] }
 0x1ab   : > { %572 = vadd.xlane.f32.xlu2 %v571_v18  ;;  %v871_v18 = vld [vmem:[%s1781_s3 + $0xf0] sm:$0xff] }
 0x1b0   : > { %v1366_v19 = vpop.eup %1164 }
 0x1b1   : > { %v687_v20 = vsel %vm564_vm1, %v1366_v19, 0.0 }
 0x1b2   : > { %688 = vadd.xlane.f32.xlu1 %v687_v20  ;;  %v843_v20 = vld [vmem:[%s1781_s3 + $0x10] sm:$0xff] }
 0x215   : > { %v631_v27 = vpop.xlane.xlu2 %630 }
 0x216   : > { %1166 = vrcp.f32 %v631_v27 }
 0x21c   : > { %v1167_v35 = vpop.eup %1166 }
 0x21d   : > { %v633_v38 = vmul.f32 %v1167_v35, %v631_v27  ;;  %v747_v39 = vpop.xlane.xlu0 %746  ;;  %v897_v27 = vld [vmem:[%s1781_s3 + $0x1c0] sm:$0xff] }
 0x21e   : > { %v573_v41 = vpop.xlane.xlu2 %572  ;;  %1168 = vrcp.f32 %v747_v39 }
 0x21f   : > { %v634_v43 = vsub.f32 2.0, %v633_v38  ;;  %1170 = vrcp.f32 %v573_v41  ;;  %v867_v38 = vld [vmem:[%s1781_s3 + $0xd0] sm:$0xff] }
 0x221   : > { %v635_v48 = vmul.f32 %v1167_v35, %v634_v43  ;;  %v792_v35 = vld [vmem:[%s1782_s4 + $0x78] sm:$0xff]  ;;  %v790_v43 = vld [vmem:[%s1782_s4 + $0x68] sm:$0xff] }
 0x223   : > { %v636_v51 = vmul.f32 %v1159_v8, %v635_v48  ;;  %v845_v8 = vld [vmem:[%s1781_s3 + $0x20] sm:$0xff] }
 0x224   : > { %v1169_v54 = vpop.eup %1168  ;;  %920 = vmatpush.msrb.mxu0 %v845_v8  ;;  %v865_v48 = vld [vmem:[%s1781_s3 + $0xc0] sm:$0xff]  ;;  %v859_v8 = vld [vmem:[%s1781_s3 + $0x90] sm:$0xff] }
 0x225   : > { %v1171_v56 = vpop.eup %1170  ;;  %v749_v57 = vmul.f32 %v1169_v54, %v747_v39  ;;  %1144 = vmatmul.msk.f32.vlgmr.msrb.gmra.mxu3 %vm564_vm1, %v636_v51  ;;  %v689_v58 = vpop.xlane.xlu1 %688  ;;  %v791_v39 = vld [vmem:[%s1782_s4 + $0x70] sm:$0xff]  ;;  %v873_v51 = vld [vmem:[%s1781_s3 + $0x100] sm:$0xff] }
 0x226   : > { %v575_v61 = vmul.f32 %v1171_v56, %v573_v41  ;;  %1172 = vrcp.f32 %v689_v58  ;;  %969 = vmatpush.msrb.mxu3 %v904_v52  ;;  %921 = vmatpush.msrb.mxu0 %v844_v11  ;;  %v875_v41 = vld [vmem:[%s1781_s3 + $0x110] sm:$0xff]  ;;  %v864_v52 = vld [vmem:[%s1781_s3 + $0xb8] sm:$0xff] }
 0x227   : > { %v750_v63 = vsub.f32 2.0, %v749_v57  ;;  %v787_v57 = vld [vmem:[%s1782_s4 + $0x50] sm:$0xff]  ;;  %v808_v11 = vld [vmem:[%s1782_s4 + $0xf8] sm:$0xff] }
 0x228   : > { %v576_v2 = vsub.f32 2.0, %v575_v61  ;;  %970 = vmatpush.msrb.mxu3 %v903_v59  ;;  %922 = vmatpush.msrb.mxu0 %v843_v20  ;;  %v823_v59 = vld [vmem:[%s1782_s4 + $0x170] sm:$0xff]  ;;  %v786_v61 = vld [vmem:[%s1782_s4 + $0x48] sm:$0xff]  ;;  %v804_v20 = vld [vmem:[%s1782_s4 + $0xd8] sm:$0xff] }
 0x229   : > { %v751_v4 = vmul.f32 %v1169_v54, %v750_v63  ;;  %v891_v54 = vld [vmem:[%s1781_s3 + $0x190] sm:$0xff]  ;;  %v822_v63 = vld [vmem:[%s1782_s4 + $0x168] sm:$0xff] }
 0x22a   : > { %v577_v7 = vmul.f32 %v1171_v56, %v576_v2  ;;  %971 = vmatpush.msrb.mxu3 %v902_v0  ;;  %923 = vmatpush.msrb.mxu0 %v842_v25  ;;  %v863_v56 = vld [vmem:[%s1781_s3 + $0xb0] sm:$0xff]  ;;  %v861_v0 = vld [vmem:[%s1781_s3 + $0xa0] sm:$0xff] }
 0x22b   : > { %v752_v9 = vmul.f32 %v1358_v15, %v751_v4  ;;  %v899_v15 = vld [vmem:[%s1781_s3 + $0x1d0] sm:$0xff]  ;;  %v785_v2 = vld [vmem:[%s1782_s4 + $0x40] sm:$0xff]  ;;  %v860_v4 = vld [vmem:[%s1781_s3 + $0x98] sm:$0xff] }
 0x22c   : > { %v1173_v12 = vpop.eup %1172  ;;  %v578_v13 = vmul.f32 %v1360_v16, %v577_v7  ;;  %972 = vmatpush.msrb.mxu3 %v901_v5  ;;  %v879_v16 = vld [vmem:[%s1781_s3 + $0x130] sm:$0xff]  ;;  %924 = vmatpush.msrb.mxu0 %v841_v30  ;;  %v820_v7 = vld [vmem:[%s1782_s4 + $0x158] sm:$0xff]  ;;  %v782_v30 = vld [vmem:[%s1782_s4 + $0x28] sm:$0xff] }
 0x22d   : > { %v691_v17 = vmul.f32 %v1173_v12, %v689_v58  ;;  %1146 = vmatmul.msk.f32.vlgmr.msra.gmra.mxu3 %vm564_vm1, %v752_v9  ;;  %958 = vmatpush.msrb.mxu2 %v879_v16  ;;  %v890_v58 = vld [vmem:[%s1781_s3 + $0x188] sm:$0xff]  ;;  %v839_v5 = vld [vmem:[%s1782_s4 + $0x1f0] sm:$0xff] }
 0x22e   : > { %1143 = vmatmul.msk.f32.vlgmr.msrb.gmra.mxu1 %vm564_vm1, %v578_v13  ;;  %973 = vmatpush.msrb.mxu3 %v900_v10  ;;  %v838_v9 = vld [vmem:[%s1782_s4 + $0x1e8] sm:$0xff]  ;;  %v857_v13 = vld [vmem:[%s1781_s3 + $0x80] sm:$0xff]  ;;  %v799_v25 = vld [vmem:[%s1782_s4 + $0xb0] sm:$0xff] }
 0x22f   : > { %v692_v21 = vsub.f32 2.0, %v691_v17  ;;  %929 = vmatpush.msrb.mxu1 %v872_v14  ;;  %959 = vmatpush.msrb.mxu2 %v878_v23  ;;  %v858_v10 = vld [vmem:[%s1781_s3 + $0x88] sm:$0xff]  ;;  %v836_v14 = vld [vmem:[%s1782_s4 + $0x1d8] sm:$0xff]  ;;  %v835_v17 = vld [vmem:[%s1782_s4 + $0x1d0] sm:$0xff] }
 0x230   : > { %974 = vmatpush.msrb.mxu3 %v899_v15  ;;  %990 = vmatpush.msra.mxu0 %v792_v35  ;;  %v807_v15 = vld [vmem:[%s1782_s4 + $0xf0] sm:$0xff]  ;;  %v806_v16 = vld [vmem:[%s1782_s4 + $0xe8] sm:$0xff]  ;;  %v801_v23 = vld [vmem:[%s1782_s4 + $0xc0] sm:$0xff] }
 0x231   : > { %v693_v26 = vmul.f32 %v1173_v12, %v692_v21  ;;  %930 = vmatpush.msrb.mxu1 %v871_v18  ;;  %960 = vmatpush.msrb.mxu2 %v877_v28  ;;  %v837_v12 = vld [vmem:[%s1782_s4 + $0x1e0] sm:$0xff]  ;;  %v803_v21 = vld [vmem:[%s1782_s4 + $0xd0] sm:$0xff] }
 0x232   : > { %975 = vmatpush.msrb.mxu3 %v898_v22  ;;  %991 = vmatpush.msra.mxu0 %v791_v39  ;;  %v805_v18 = vld [vmem:[%s1782_s4 + $0xe0] sm:$0xff]  ;;  %v802_v22 = vld [vmem:[%s1782_s4 + $0xc8] sm:$0xff]  ;;  %v819_v28 = vld [vmem:[%s1782_s4 + $0x150] sm:$0xff] }
 0x233   : > { %v694_v31 = vmul.f32 %v1366_v19, %v693_v26  ;;  %931 = vmatpush.msrb.mxu1 %v870_v24  ;;  %v895_v19 = vld [vmem:[%s1781_s3 + $0x1b0] sm:$0xff]  ;;  %961 = vmatpush.msrb.mxu2 %v876_v37  ;;  %v800_v24 = vld [vmem:[%s1782_s4 + $0xb8] sm:$0xff]  ;;  %v781_v35 = vld [vmem:[%s1782_s4 + $0x20] sm:$0xff] }
 0x234   : > { %976 = vmatpush.msrb.mxu3 %v897_v27  ;;  %992 = vmatpush.msra.mxu0 %v790_v43  ;;  %v783_v26 = vld [vmem:[%s1782_s4 + $0x30] sm:$0xff]  ;;  %v798_v27 = vld [vmem:[%s1782_s4 + $0xa8] sm:$0xff]  ;;  %v817_v37 = vld [vmem:[%s1782_s4 + $0x140] sm:$0xff] }
 0x235   : > { %932 = vmatpush.msrb.mxu1 %v869_v29  ;;  %962 = vmatpush.msrb.mxu2 %v875_v41  ;;  %v834_v29 = vld [vmem:[%s1782_s4 + $0x1c8] sm:$0xff]  ;;  %v780_v39 = vld [vmem:[%s1782_s4 + $0x18] sm:$0xff]  ;;  %v779_v43 = vld [vmem:[%s1782_s4 + $0x10] sm:$0xff] }
 0x236   : > { %1145 = vmatmul.msk.f32.vlgmr.msra.gmra.mxu1 %vm564_vm1, %v694_v31  ;;  %977 = vmatpush.msrb.mxu3 %v896_v32  ;;  %v797_v31 = vld [vmem:[%s1782_s4 + $0xa0] sm:$0xff]  ;;  %v818_v32 = vld [vmem:[%s1782_s4 + $0x148] sm:$0xff]  ;;  %v816_v41 = vld [vmem:[%s1782_s4 + $0x138] sm:$0xff] }
 0x237   : > { %933 = vmatpush.msrb.mxu1 %v868_v33  ;;  %963 = vmatpush.msrb.mxu2 %v874_v47  ;;  %v833_v33 = vld [vmem:[%s1782_s4 + $0x1c0] sm:$0xff]  ;;  %v815_v47 = vld [vmem:[%s1782_s4 + $0x130] sm:$0xff] }
 0x238   : > { %978 = vmatpush.msrb.mxu3 %v895_v19  ;;  %993 = vmatpush.msra.mxu0 %v789_v49  ;;  %v796_v19 = vld [vmem:[%s1782_s4 + $0x98] sm:$0xff]  ;;  %v778_v49 = vld [vmem:[%s1782_s4 + $0x8] sm:$0xff] }
 0x239   : > { %934 = vmatpush.msrb.mxu1 %v867_v38  ;;  %964 = vmatpush.msrb.mxu2 %v873_v51  ;;  %v832_v38 = vld [vmem:[%s1782_s4 + $0x1b8] sm:$0xff]  ;;  %v814_v51 = vld [vmem:[%s1782_s4 + $0x128] sm:$0xff] }
 0x23a   : > { %979 = vmatpush.msrb.mxu3 %v894_v40  ;;  %994 = vmatpush.msra.mxu0 %v788_v53  ;;  %v795_v40 = vld [vmem:[%s1782_s4 + $0x90] sm:$0xff]  ;;  %v777_v53 = vld [vmem:[%s1782_s4] sm:$0xff] }
 0x23b   : > { %935 = vmatpush.msrb.mxu1 %v866_v42  ;;  %1030 = vmatpush.msra.mxu2 %v824_v55  ;;  %v831_v42 = vld [vmem:[%s1782_s4 + $0x1b0] sm:$0xff]  ;;  %v828_v55 = vld [vmem:[%s1782_s4 + $0x198] sm:$0xff] }
 0x23c   : > { %980 = vmatpush.msrb.mxu3 %v893_v46  ;;  %995 = vmatpush.msra.mxu0 %v787_v57  ;;  %v794_v46 = vld [vmem:[%s1782_s4 + $0x88] sm:$0xff]  ;;  %v827_v57 = vld [vmem:[%s1782_s4 + $0x190] sm:$0xff] }
 0x23d   : > { %936 = vmatpush.msrb.mxu1 %v865_v48  ;;  %1031 = vmatpush.msra.mxu2 %v823_v59  ;;  %v830_v48 = vld [vmem:[%s1782_s4 + $0x1a8] sm:$0xff] }
 0x23e   : > { %981 = vmatpush.msrb.mxu3 %v892_v50  ;;  %996 = vmatpush.msra.mxu0 %v786_v61  ;;  %v793_v50 = vld [vmem:[%s1782_s4 + $0x80] sm:$0xff]  ;;  %v826_v59 = vld [vmem:[%s1782_s4 + $0x188] sm:$0xff] }
 0x23f   : > { %937 = vmatpush.msrb.mxu1 %v864_v52  ;;  %1032 = vmatpush.msra.mxu2 %v822_v63  ;;  %v829_v52 = vld [vmem:[%s1782_s4 + $0x1a0] sm:$0xff] }
 0x240   : > { %982 = vmatpush.msrb.mxu3 %v891_v54  ;;  %997 = vmatpush.msra.mxu0 %v785_v2  ;;  %v813_v54 = vld [vmem:[%s1782_s4 + $0x120] sm:$0xff] }
 0x241   : > { %938 = vmatpush.msrb.mxu1 %v863_v56  ;;  %1033 = vmatpush.msra.mxu2 %v821_v3  ;;  %v812_v56 = vld [vmem:[%s1782_s4 + $0x118] sm:$0xff]  ;;  %v825_v61 = vld [vmem:[%s1782_s4 + $0x180] sm:$0xff] }
 0x242   : > { %983 = vmatpush.msrb.mxu3 %v890_v58  ;;  %998 = vmatpush.msra.mxu0 %v784_v6  ;;  %v811_v58 = vld [vmem:[%s1782_s4 + $0x110] sm:$0xff] }
 0x243   : > { %939 = vmatpush.msrb.mxu1 %v862_v60  ;;  %1034 = vmatpush.msra.mxu2 %v820_v7  ;;  %v810_v60 = vld [vmem:[%s1782_s4 + $0x108] sm:$0xff] }
 0x244   : > { %984 = vmatpush.msrb.mxu3 %v889_v62  ;;  %999 = vmatpush.msra.mxu0 %v783_v26  ;;  %v809_v62 = vld [vmem:[%s1782_s4 + $0x100] sm:$0xff] }
 0x245   : > { %940 = vmatpush.msrb.mxu1 %v861_v0  ;;  %1035 = vmatpush.msra.mxu2 %v819_v28 }
 0x246   : > { %1050 = vmatpush.msra.mxu3 %v840_v1  ;;  %1000 = vmatpush.msra.mxu0 %v782_v30 }
 0x247   : > { %941 = vmatpush.msrb.mxu1 %v860_v4  ;;  %1036 = vmatpush.msra.mxu2 %v818_v32 }
 0x248   : > { %1051 = vmatpush.msra.mxu3 %v839_v5  ;;  %1001 = vmatpush.msra.mxu0 %v781_v35 }
 0x249   : > { %942 = vmatpush.msrb.mxu1 %v859_v8  ;;  %1037 = vmatpush.msra.mxu2 %v817_v37 }
 0x24a   : > { %1052 = vmatpush.msra.mxu3 %v838_v9  ;;  %1002 = vmatpush.msra.mxu0 %v780_v39 }
 0x24b   : > { %943 = vmatpush.msrb.mxu1 %v858_v10  ;;  %1038 = vmatpush.msra.mxu2 %v816_v41 }
 0x24c   : > { %1053 = vmatpush.msra.mxu3 %v837_v12  ;;  %1003 = vmatpush.msra.mxu0 %v779_v43 }
 0x24d   : > { %944 = vmatpush.msrb.mxu1 %v857_v13  ;;  %1039 = vmatpush.msra.mxu2 %v815_v47 }
 0x24e   : > { %1054 = vmatpush.msra.mxu3 %v836_v14  ;;  %1004 = vmatpush.msra.mxu0 %v778_v49 }
 0x24f   : > { %1010 = vmatpush.msra.mxu1 %v808_v11  ;;  %1040 = vmatpush.msra.mxu2 %v814_v51 }
 0x250   : > { %1055 = vmatpush.msra.mxu3 %v835_v17  ;;  %1005 = vmatpush.msra.mxu0 %v777_v53 }
 0x251   : > { %1011 = vmatpush.msra.mxu1 %v807_v15  ;;  %1041 = vmatpush.msra.mxu2 %v813_v54 }
 0x252   : > { %1056 = vmatpush.msra.mxu3 %v834_v29 }
 0x253   : > { %1012 = vmatpush.msra.mxu1 %v806_v16  ;;  %1042 = vmatpush.msra.mxu2 %v812_v56 }
 0x254   : > { %1057 = vmatpush.msra.mxu3 %v833_v33 }
 0x255   : > { %1013 = vmatpush.msra.mxu1 %v805_v18  ;;  %1043 = vmatpush.msra.mxu2 %v811_v58 }
 0x256   : > { %1058 = vmatpush.msra.mxu3 %v832_v38 }
 0x257   : > { %1014 = vmatpush.msra.mxu1 %v804_v20  ;;  %1044 = vmatpush.msra.mxu2 %v810_v60 }
 0x258   : > { %1059 = vmatpush.msra.mxu3 %v831_v42 }
 0x259   : > { %1015 = vmatpush.msra.mxu1 %v803_v21  ;;  %1045 = vmatpush.msra.mxu2 %v809_v62 }
 0x25a   : > { %1060 = vmatpush.msra.mxu3 %v830_v48 }
 0x25b   : > { %1016 = vmatpush.msra.mxu1 %v802_v22 }
 0x25c   : > { %1061 = vmatpush.msra.mxu3 %v829_v52 }
 0x25d   : > { %1017 = vmatpush.msra.mxu1 %v801_v23 }
 0x25e   : > { %1062 = vmatpush.msra.mxu3 %v828_v55 }
 0x25f   : > { %1018 = vmatpush.msra.mxu1 %v800_v24 }
 0x260   : > { %1063 = vmatpush.msra.mxu3 %v827_v57 }
 0x261   : > { %1019 = vmatpush.msra.mxu1 %v799_v25 }
 0x262   : > { %1064 = vmatpush.msra.mxu3 %v826_v59 }
 0x263   : > { %1020 = vmatpush.msra.mxu1 %v798_v27 }
 0x264   : > { %1065 = vmatpush.msra.mxu3 %v825_v61 }
 0x265   : > { %1021 = vmatpush.msra.mxu1 %v797_v31 }
 0x267   : > { %1022 = vmatpush.msra.mxu1 %v796_v19 }
 0x269   : > { %1023 = vmatpush.msra.mxu1 %v795_v40 }
 0x26b   : > { %1024 = vmatpush.msra.mxu1 %v794_v46 }
 0x26d   : > { %1025 = vmatpush.msra.mxu1 %v793_v50 }
 0x2a8   : > { %v657_v63 = vpop.f32.mrf.mxu3 }
 0x2a9   : > { %v660_v0 = vadd.f32 %v657_v63, %v1320_v36  ;;  %v1157_v36 = vld [vmem:[%s1783_s5] ss:$0 sm:$0xff] }
 0x2ab   : > { %v599_v1 = vpop.f32.mrf.mxu1  ;;  %945 = vmatmul.f32.vlgmr.msrb.gmra.mxu1 %v660_v0 }
 0x2ac   : > { %v602_v2 = vadd.f32 %v599_v1, %v1318_v34 }
 0x2ae   : > { %925 = vmatmul.f32.vlgmr.msrb.gmra.mxu0 %v602_v2 }
 0x2b0   : > { %v773_v3 = vpop.f32.mrf.mxu3 }
 0x2b1   : > { %v776_v4 = vadd.f32 %v773_v3, %v1326_v45 }
 0x2b3   : > { %v715_v5 = vpop.f32.mrf.mxu1  ;;  %985 = vmatmul.f32.vlgmr.msrb.gmra.mxu3 %v776_v4  ;;  %1026 = vmatmul.f32.vlgmr.msra.gmra.mxu1 %v660_v0 }
 0x2b4   : > { %v718_v6 = vadd.f32 %v715_v5, %v1324_v44 }
 0x2b6   : > { %965 = vmatmul.f32.vlgmr.msrb.gmra.mxu2 %v718_v6  ;;  %1006 = vmatmul.f32.vlgmr.msra.gmra.mxu0 %v602_v2 }
 0x2bb   : > { %1066 = vmatmul.f32.vlgmr.msra.gmra.mxu3 %v776_v4 }
 0x2be   : > { %1046 = vmatmul.f32.vlgmr.msra.gmra.mxu2 %v718_v6 }
 0x328   : > { %v946_v8 = vpop.f32.mrf.mxu1 }
 0x32b   : > { %v926_v7 = vpop.f32.mrf.mxu0 }
 0x32c   : > { %v927_v34 = vadd.f32 %v1157_v36, %v926_v7 }
 0x32e   : > { %v947_v9 = vadd.f32 %v946_v8, %v927_v34 }
 0x330   : > { %v1027_v17 = vpop.f32.mrf.mxu1 }
 0x333   : > { %v1007_v11 = vpop.f32.mrf.mxu0 }
 0x336   : > { %v986_v12 = vpop.f32.mrf.mxu3 }
 0x339   : > { %v966_v10 = vpop.f32.mrf.mxu2 }
 0x33a   : > { %v967_v45 = vadd.f32 %v966_v10, %v947_v9 }
 0x33c   : > { %v987_v13 = vadd.f32 %v986_v12, %v967_v45 }
 0x33e   : > { %v989_v14 = vmax.f32 %v987_v13, 0.0  ;;  %v1067_v20 = vpop.f32.mrf.mxu3 }
 0x340   : > { %v1008_v44 = vadd.f32 %v1007_v11, %v989_v14 }
 0x341   : > { %v1047_v16 = vpop.f32.mrf.mxu2 }
 0x342   : > { %v1028_v15 = vadd.f32 %v1027_v17, %v1008_v44 }
 0x344   : > { %v1048_v18 = vadd.f32 %v1047_v16, %v1028_v15 }
 0x346   : > { %v1068_v21 = vadd.f32 %v1067_v20, %v1048_v18 }
 0x348   : > { %1070 = vst [vmem:[%s246_s20] sm:$0xff] %v1068_v21 }
 0x349 PF: > { %s16_s21 = sadd.s32 1, %s1180_s21  }
 0x34a   : > { %p13_p4 = scmp.ge.s32.totalorder %s16_s21, 4  }
 0x34c   :  { %15 = sbr.rel (!%p13_p4) target bundleno = 1 (0x1), region = 74 }

</bundles_post_ra>
